<compile_context>
chip_gen: v7x
topology: tpu7x:2x2x1
jax: 0.10.0
libtpu: 0.0.40
codegen_flags: <defaults>
</compile_context>

<pallas_src>
import jax
import jax.numpy as jnp
from jax.experimental import pallas as pl
from jax.experimental.pallas import tpu as pltpu


def _round_up(v, m):
    return (v + m - 1) // m * m


def mlp_kernel(x_ref, w1_ref, b1_ref, w2_ref, b2_ref, o_ref):
    # Layer 1: f32 MXU matmul (K = D_in is tiny), f32 bias-add + ReLU on the VPU.
    # Padded H columns are exactly 0 (zero weight columns, zero bias) so they
    # contribute nothing to the reduction below.
    h = jnp.dot(x_ref[...], w1_ref[...], preferred_element_type=jnp.float32)
    h = jnp.maximum(h + b1_ref[...], 0.0)
    # Layer 2 (D_out == 1): a 1-wide MXU pass would be 1/128 utilized, so do a
    # VPU multiply + cross-lane (XLU) reduction and write an un-padded
    # (tile_n, 1) output instead.
    y = jnp.sum(h * w2_ref[...], axis=-1, keepdims=True) + b2_ref[...]
    o_ref[...] = y.astype(o_ref.dtype)


def prepare_params(w1, b1, w2, b2):
    """One-time weight prep (model init): transpose + zero-pad H to a multiple of
    128 so every weight load in the kernel is lane-dense.  Hoisted out of the
    per-call forward path."""
    H, D_in = w1.shape
    D_out = w2.shape[0]
    assert D_out == 1, "kernel specializes layer 2 to D_out == 1 (per module spec)"
    H_p = _round_up(max(H, 1), 128)

    w1_t = jnp.zeros((D_in, H_p), jnp.float32).at[:, :H].set(w1.T.astype(jnp.float32))
    b1_p = jnp.zeros((1, H_p), jnp.float32).at[0, :H].set(b1.astype(jnp.float32))
    w2_r = jnp.zeros((1, H_p), jnp.float32).at[0, :H].set(
        w2.reshape(-1).astype(jnp.float32))
    b2_p = b2.reshape(1, 1).astype(jnp.float32)
    return (w1_t, b1_p, w2_r, b2_p)


def _pick_tile_n(n):
    # Fewer, fatter grid steps for small N (per-step overhead dominates at these
    # shapes: v5e/v6e have one TC and nothing hides the ~0.35us/step); for large
    # N keep >=2 "parallel" steps of >=256 rows so both v7x TensorCores get work.
    n8 = _round_up(max(n, 8), 8)
    if n8 <= 512:
        return n8
    return min(512, _round_up(pl.cdiv(n8, 2), 8))


def two_layer_net(x, params, *, tile_n=None):
    """Forward pass of TwoLayerNet.

    x:      (N, D_in) f32
    params: output of prepare_params(w1, b1, w2, b2)
    Returns (N, 1) f32.
    """
    w1_t, b1_p, w2_r, b2_p = params
    x = x.astype(jnp.float32)
    N, D_in = x.shape
    assert w1_t.shape[0] == D_in
    H_p = w1_t.shape[1]

    if tile_n is None:
        tile_n = _pick_tile_n(N)
    N_p = _round_up(N, tile_n)
    if N_p != N:
        x = jnp.zeros((N_p, D_in), jnp.float32).at[:N].set(x)
    grid = (N_p // tile_n,)

    # Advisory cost estimate from the REAL dims (un-padded x, 1-wide output).
    flops = 2 * N_p * D_in * H_p + 3 * N_p * H_p  # matmul + (relu, mul, reduce)
    bytes_accessed = (
        int(N_p * D_in * 4)
        + sum(int(p.size) * 4 for p in params)
        + int(N_p * 4))

    out = pl.pallas_call(
        mlp_kernel,
        out_shape=jax.ShapeDtypeStruct((N_p, 1), jnp.float32),
        grid_spec=pltpu.PrefetchScalarGridSpec(
            num_scalar_prefetch=0,
            grid=grid,
            in_specs=[
                # x tiles march along the batch axis (double-buffered); the last
                # dim is the REAL D_in (== full array dim), no lane padding.
                pl.BlockSpec((tile_n, D_in), lambda i: (i, 0)),
                # Weights / biases: constant block index -> DMA'd once, resident
                # in VMEM across all grid steps.
                pl.BlockSpec((D_in, H_p), lambda i: (0, 0)),
                pl.BlockSpec((1, H_p), lambda i: (0, 0)),
                pl.BlockSpec((1, H_p), lambda i: (0, 0)),
                pl.BlockSpec((1, 1), lambda i: (0, 0)),
            ],
            # Un-padded output: (tile_n, 1) blocks of an (N_p, 1) array.
            out_specs=pl.BlockSpec((tile_n, 1), lambda i: (i, 0)),
        ),
        compiler_params=pltpu.CompilerParams(
            # Batch tiles are independent -> shard across TensorCores on v7x.
            dimension_semantics=("parallel",),
            vmem_limit_bytes=32 * 1024 * 1024,  # well under v7x's 64 MiB
        ),
        cost_estimate=pl.CostEstimate(
            flops=flops, transcendentals=0, bytes_accessed=bytes_accessed),
    )(x, w1_t, b1_p, w2_r, b2_p)

    return out[:N]


if __name__ == "__main__":
    # Shapes implied by the module: D_in = x.shape[1], H = 50, D_out = 1.
    N, D_in, H, D_out = 256, 16, 50, 1

    key = jax.random.PRNGKey(0)
    kx, kw1, kb1, kw2, kb2 = jax.random.split(key, 5)

    x = jax.random.normal(kx, (N, D_in), dtype=jnp.float32)

    # Deterministic init mimicking torch.nn.Linear's U(-1/sqrt(fan_in), 1/sqrt(fan_in)).
    bound1 = 1.0 / jnp.sqrt(jnp.float32(D_in))
    w1 = jax.random.uniform(kw1, (H, D_in), jnp.float32, -bound1, bound1)   # (out, in)
    b1 = jax.random.uniform(kb1, (H,), jnp.float32, -bound1, bound1)

    bound2 = 1.0 / jnp.sqrt(jnp.float32(H))
    w2 = jax.random.uniform(kw2, (D_out, H), jnp.float32, -bound2, bound2)  # (out, in)
    b2 = jax.random.uniform(kb2, (D_out,), jnp.float32, -bound2, bound2)

    # One-time weight prep (hoisted out of the per-call forward path).
    params = jax.block_until_ready(prepare_params(w1, b1, w2, b2))

    fwd = jax.jit(two_layer_net)
    y = jax.block_until_ready(fwd(x, params))

    # Pure-JAX f32 reference of the PyTorch forward.  Layer 2 is exact f32 on the
    # VPU; tolerance covers a possible reduced-precision MXU pass in layer 1.
    h_ref = jnp.maximum(x @ w1.T + b1, 0.0)
    y_ref = h_ref @ w2.T + b2
    assert y.shape == (N, D_out)
    assert jnp.allclose(y, y_ref, atol=2e-2, rtol=2e-2), float(
        jnp.max(jnp.abs(y - y_ref)))

    print("KERNEL_OK")
</pallas_src>

<mosaic_0001>
module attributes {stable_mosaic.version = 11 : i64} {
  func.func @mlp_kernel(%arg0: i32, %arg1: memref<256x16xf32, #tpu.memory_space<vmem>>, %arg2: memref<16x128xf32, #tpu.memory_space<vmem>>, %arg3: memref<1x128xf32, #tpu.memory_space<vmem>>, %arg4: memref<1x128xf32, #tpu.memory_space<vmem>>, %arg5: memref<1x1xf32, #tpu.memory_space<vmem>>, %arg6: memref<256x1xf32, #tpu.memory_space<vmem>>) attributes {dimension_semantics = [#tpu.dimension_semantics<parallel>], iteration_bounds = array<i64: 1>, scalar_prefetch = 0 : i64, scratch_operands = 0 : i64, tpu.core_type = #tpu.core_type<tc>, window_params = [{transform_indices = @transform_0, window_bounds = array<i64: 256, 16>}, {pipeline_mode = #tpu.pipeline_mode<synchronous>, transform_indices = @transform_1, window_bounds = array<i64: 16, 128>}, {pipeline_mode = #tpu.pipeline_mode<synchronous>, transform_indices = @transform_2, window_bounds = array<i64: 1, 128>}, {pipeline_mode = #tpu.pipeline_mode<synchronous>, transform_indices = @transform_3, window_bounds = array<i64: 1, 128>}, {pipeline_mode = #tpu.pipeline_mode<synchronous>, transform_indices = @transform_4, window_bounds = array<i64: 1, 1>}, {transform_indices = @transform_5, window_bounds = array<i64: 256, 1>}]} {
    %c0 = arith.constant 0 : index
    %c0_0 = arith.constant 0 : index
    %0 = vector.load %arg1[%c0, %c0_0] : memref<256x16xf32, #tpu.memory_space<vmem>>, vector<256x16xf32>
    %c0_1 = arith.constant 0 : index
    %c0_2 = arith.constant 0 : index
    %1 = vector.load %arg2[%c0_1, %c0_2] : memref<16x128xf32, #tpu.memory_space<vmem>>, vector<16x128xf32>
    %cst = arith.constant dense<0.000000e+00> : vector<256x128xf32>
    %2 = tpu.matmul %0, %1, %cst {dimension_numbers = #tpu.dot_dimension_numbers<[1], [0], [0], [1], [0, 0, 1, 1], [], []>} : vector<256x16xf32>, vector<16x128xf32>, vector<256x128xf32> -> vector<256x128xf32>
    %c0_3 = arith.constant 0 : index
    %c0_4 = arith.constant 0 : index
    %3 = vector.load %arg3[%c0_3, %c0_4] : memref<1x128xf32, #tpu.memory_space<vmem>>, vector<1x128xf32>
    %4 = vector.broadcast %3 : vector<1x128xf32> to vector<256x128xf32>
    %5 = arith.addf %2, %4 : vector<256x128xf32>
    %cst_5 = arith.constant 0.000000e+00 : f32
    %6 = vector.broadcast %cst_5 : f32 to vector<256x128xf32>
    %7 = arith.maximumf %5, %6 : vector<256x128xf32>
    %c0_6 = arith.constant 0 : index
    %c0_7 = arith.constant 0 : index
    %8 = vector.load %arg4[%c0_6, %c0_7] : memref<1x128xf32, #tpu.memory_space<vmem>>, vector<1x128xf32>
    %9 = vector.broadcast %8 : vector<1x128xf32> to vector<256x128xf32>
    %10 = arith.mulf %7, %9 : vector<256x128xf32>
    %cst_8 = arith.constant dense<0.000000e+00> : vector<256xf32>
    %11 = vector.multi_reduction <add>, %10, %cst_8 [1] : vector<256x128xf32> to vector<256xf32>
    %12 = vector.shape_cast %11 : vector<256xf32> to vector<256x1xf32>
    %c0_9 = arith.constant 0 : index
    %c0_10 = arith.constant 0 : index
    %13 = vector.load %arg5[%c0_9, %c0_10] : memref<1x1xf32, #tpu.memory_space<vmem>>, vector<1x1xf32>
    %14 = vector.broadcast %13 : vector<1x1xf32> to vector<256x1xf32>
    %15 = arith.addf %12, %14 : vector<256x1xf32>
    %c0_11 = arith.constant 0 : index
    %c0_12 = arith.constant 0 : index
    %16 = vector.load %arg6[%c0_11, %c0_12] : memref<256x1xf32, #tpu.memory_space<vmem>>, vector<256x1xf32>
    tpu.vector_store %arg6[%c0_11, %c0_12], %15 {strides = array<i32>} : memref<256x1xf32, #tpu.memory_space<vmem>>, vector<256x1xf32>,
    return
  }
  func.func @transform_0(%arg0: i32) -> (i32, i32) {
    %c0_i32 = arith.constant 0 : i32
    %c0_i32_0 = arith.constant 0 : i32
    return %arg0, %c0_i32 : i32, i32
  }
  func.func @transform_1(%arg0: i32) -> (i32, i32) {
    %c0_i32 = arith.constant 0 : i32
    %c0_i32_0 = arith.constant 0 : i32
    %c0_i32_1 = arith.constant 0 : i32
    return %c0_i32, %c0_i32_0 : i32, i32
  }
  func.func @transform_2(%arg0: i32) -> (i32, i32) {
    %c0_i32 = arith.constant 0 : i32
    %c0_i32_0 = arith.constant 0 : i32
    %c0_i32_1 = arith.constant 0 : i32
    return %c0_i32, %c0_i32_0 : i32, i32
  }
  func.func @transform_3(%arg0: i32) -> (i32, i32) {
    %c0_i32 = arith.constant 0 : i32
    %c0_i32_0 = arith.constant 0 : i32
    %c0_i32_1 = arith.constant 0 : i32
    return %c0_i32, %c0_i32_0 : i32, i32
  }
  func.func @transform_4(%arg0: i32) -> (i32, i32) {
    %c0_i32 = arith.constant 0 : i32
    %c0_i32_0 = arith.constant 0 : i32
    %c0_i32_1 = arith.constant 0 : i32
    return %c0_i32, %c0_i32_0 : i32, i32
  }
  func.func @transform_5(%arg0: i32) -> (i32, i32) {
    %c0_i32 = arith.constant 0 : i32
    %c0_i32_0 = arith.constant 0 : i32
    return %arg0, %c0_i32 : i32, i32
  }
}

</mosaic_0001>

<bundles_post_ra>
// kernel: two_layer_net.1
= control target key start
LH: loop header
LB: loop body
LE: loop exit
PB: predicated region body
PF: predicated region fallthrough
CT: control target
= control target key end

     0   :  { %vm63_vm0 = vcmask 130048   ;;  %vm559_vm1 = vcmask 7168   ;;  %s1126_s1 = inlined_call_operand.vmem [shape: f32[16,128], index: 1, kind: input, shape index: {}]   ;;  %s1127_s0 = inlined_call_operand.vmem [shape: f32[256,16], index: 0, kind: input, shape index: {}]   ;;  %s1128_s4 = inlined_call_operand.<no memory space> [shape: f32[1,1], index: 4, kind: input, shape index: {}]   ;;  %s1129_s2 = inlined_call_operand.vmem [shape: f32[1,128], index: 2, kind: input, shape index: {}]   ;;  %s1130_s3 = inlined_call_operand.vmem [shape: f32[1,128], index: 3, kind: input, shape index: {}]   ;;  %s1131_s5 = inlined_call_operand.vmem [shape: f32[256,1], index: 5, kind: output, shape index: {}]  }
   0x1   :  { %v54_v0 = vld [vmem:[%s1126_s1] sm:$0xff]  ;;  %v55_v1 = vld [vmem:[%s1126_s1 + $0x8] sm:$0xff]  ;;  %v24_v7 = vld [vmem:[%s1127_s0 + $0x10] sm:$0xff]  ;;  %v10_v35 = vstv %s1128_s4 }
   0x2   :  { %v22_v2 = vld [vmem:[%s1127_s0] sm:$0xff]  ;;  %v717_v3 = vpack.c.bf16 %v55_v1, %v54_v0  ;;  %v23_v5 = vld [vmem:[%s1127_s0 + $0x8] sm:$0xff]  ;;  %v40_v8 = vld [vmem:[%s1127_s0 + $0x90] sm:$0xff]  ;;  %11 = vst [vmem:[#allocation2] sm:$0x1] %v10_v35 }
   0x3   :  { %669 = vmatprep.mubr.msk.f32.mxu0 %vm63_vm0, %v22_v2  ;;  %v38_v4 = vld [vmem:[%s1127_s0 + $0x80] sm:$0xff]  ;;  %v39_v6 = vld [vmem:[%s1127_s0 + $0x88] sm:$0xff]  ;;  %v25_v9 = vld [vmem:[%s1127_s0 + $0x18] sm:$0xff] }
   0x4   :  { %693 = vmatprep.mubr.msk.f32.mxu1 %vm63_vm0, %v38_v4  ;;  %718 = vmatprep.subr.bf16.mxu0 %v717_v3  ;;  %v41_v10 = vld [vmem:[%s1127_s0 + $0x98] sm:$0xff]  ;;  %v26_v11 = vld [vmem:[%s1127_s0 + $0x20] sm:$0xff]  ;;  %v27_v13 = vld [vmem:[%s1127_s0 + $0x28] sm:$0xff] }
   0x5   :  { %721 = vmatprep.subr.bf16.mxu1 %v717_v3  ;;  %720 = vmatpush3.bf16.msra.mxu0 %v717_v3  ;;  %v42_v12 = vld [vmem:[%s1127_s0 + $0xa0] sm:$0xff]  ;;  %v43_v14 = vld [vmem:[%s1127_s0 + $0xa8] sm:$0xff]  ;;  %v28_v15 = vld [vmem:[%s1127_s0 + $0x30] sm:$0xff] }
   0x6   :  { %722 = vmatpush3.bf16.msra.mxu1 %v717_v3  ;;  %v44_v16 = vld [vmem:[%s1127_s0 + $0xb0] sm:$0xff]  ;;  %v29_v17 = vld [vmem:[%s1127_s0 + $0x38] sm:$0xff]  ;;  %v30_v19 = vld [vmem:[%s1127_s0 + $0x40] sm:$0xff] }
   0x7   :  { %v45_v18 = vld [vmem:[%s1127_s0 + $0xb8] sm:$0xff]  ;;  %v46_v20 = vld [vmem:[%s1127_s0 + $0xc0] sm:$0xff]  ;;  %v31_v21 = vld [vmem:[%s1127_s0 + $0x48] sm:$0xff] }
   0x8   :  { %670 = vmatmul.mubr.msk.f32.vlgmr.msra.gmra.mrb[0].mxu0 %vm63_vm0, %v23_v5  ;;  %v47_v22 = vld [vmem:[%s1127_s0 + $0xc8] sm:$0xff]  ;;  %v32_v23 = vld [vmem:[%s1127_s0 + $0x50] sm:$0xff]  ;;  %v33_v25 = vld [vmem:[%s1127_s0 + $0x58] sm:$0xff] }
   0x9   :  { %694 = vmatmul.mubr.msk.f32.vlgmr.msra.gmra.mrb[0].mxu1 %vm63_vm0, %v39_v6  ;;  %672 = vmatprep.mubr.msk.f32.mxu0 %vm63_vm0, %v24_v7  ;;  %v48_v24 = vld [vmem:[%s1127_s0 + $0xd0] sm:$0xff]  ;;  %v49_v26 = vld [vmem:[%s1127_s0 + $0xd8] sm:$0xff]  ;;  %v34_v27 = vld [vmem:[%s1127_s0 + $0x60] sm:$0xff] }
   0xa   :  { %696 = vmatprep.mubr.msk.f32.mxu1 %vm63_vm0, %v40_v8  ;;  %v50_v28 = vld [vmem:[%s1127_s0 + $0xe0] sm:$0xff]  ;;  %v35_v29 = vld [vmem:[%s1127_s0 + $0x68] sm:$0xff]  ;;  %v36_v31 = vld [vmem:[%s1127_s0 + $0x70] sm:$0xff] }
   0xb   :  { %v51_v30 = vld [vmem:[%s1127_s0 + $0xe8] sm:$0xff]  ;;  %v52_v32 = vld [vmem:[%s1127_s0 + $0xf0] sm:$0xff]  ;;  %v37_v33 = vld [vmem:[%s1127_s0 + $0x78] sm:$0xff] }
   0xc   :  { %673 = vmatmul.mubr.msk.f32.gmra.mrb[2].mxu0 %vm63_vm0, %v25_v9  ;;  %v53_v34 = vld [vmem:[%s1127_s0 + $0xf8] sm:$0xff]  ;;  %v893_v36 = vld [vmem:[%s1129_s2] ss:$0 sm:$0xff] }
   0xd   :  { %697 = vmatmul.mubr.msk.f32.gmra.mrb[2].mxu1 %vm63_vm0, %v41_v10  ;;  %675 = vmatprep.mubr.msk.f32.mxu0 %vm63_vm0, %v26_v11  ;;  %v901_v44 = vld [vmem:[%s1130_s3] ss:$0 sm:$0xff] }
   0xe   :  { %699 = vmatprep.mubr.msk.f32.mxu1 %vm63_vm0, %v42_v12 }
  0x10   :  { %676 = vmatmul.mubr.msk.f32.gmra.mrb[4].mxu0 %vm63_vm0, %v27_v13 }
  0x11   :  { %700 = vmatmul.mubr.msk.f32.gmra.mrb[4].mxu1 %vm63_vm0, %v43_v14  ;;  %678 = vmatprep.mubr.msk.f32.mxu0 %vm63_vm0, %v28_v15 }
  0x12   :  { %702 = vmatprep.mubr.msk.f32.mxu1 %vm63_vm0, %v44_v16 }
  0x14   :  { %679 = vmatmul.mubr.msk.f32.gmra.mrb[6].mxu0 %vm63_vm0, %v29_v17 }
  0x15   :  { %703 = vmatmul.mubr.msk.f32.gmra.mrb[6].mxu1 %vm63_vm0, %v45_v18  ;;  %681 = vmatprep.mubr.msk.f32.mxu0 %vm63_vm0, %v30_v19 }
  0x16   :  { %705 = vmatprep.mubr.msk.f32.mxu1 %vm63_vm0, %v46_v20 }
  0x18   :  { %682 = vmatmul.mubr.msk.f32.gmra.mrb[8].mxu0 %vm63_vm0, %v31_v21 }
  0x19   :  { %706 = vmatmul.mubr.msk.f32.gmra.mrb[8].mxu1 %vm63_vm0, %v47_v22  ;;  %684 = vmatprep.mubr.msk.f32.mxu0 %vm63_vm0, %v32_v23 }
  0x1a   :  { %708 = vmatprep.mubr.msk.f32.mxu1 %vm63_vm0, %v48_v24 }
  0x1c   :  { %685 = vmatmul.mubr.msk.f32.gmra.mrb[10].mxu0 %vm63_vm0, %v33_v25 }
  0x1d   :  { %709 = vmatmul.mubr.msk.f32.gmra.mrb[10].mxu1 %vm63_vm0, %v49_v26  ;;  %687 = vmatprep.mubr.msk.f32.mxu0 %vm63_vm0, %v34_v27 }
  0x1e   :  { %711 = vmatprep.mubr.msk.f32.mxu1 %vm63_vm0, %v50_v28 }
  0x20   :  { %688 = vmatmul.mubr.msk.f32.gmra.mrb[12].mxu0 %vm63_vm0, %v35_v29 }
  0x21   :  { %712 = vmatmul.mubr.msk.f32.gmra.mrb[12].mxu1 %vm63_vm0, %v51_v30  ;;  %690 = vmatprep.mubr.msk.f32.mxu0 %vm63_vm0, %v36_v31 }
  0x22   :  { %714 = vmatprep.mubr.msk.f32.mxu1 %vm63_vm0, %v52_v32 }
  0x24   :  { %691 = vmatmul.mubr.msk.f32.gmra.mrb[14].mxu0 %vm63_vm0, %v37_v33 }
  0x25   :  { %715 = vmatmul.mubr.msk.f32.gmra.mrb[14].mxu1 %vm63_vm0, %v53_v34 }
  0xdb   :  { %v671_v37 = vpop.f32.mrb[0].mxu0 }
  0xdc   :  { %v695_v38 = vpop.f32.mrb[0].mxu1  ;;  %v232_v39 = vadd.f32 %v671_v37, %v893_v36  ;;  %v226_v41 = vpop.f32.mrb[1].mxu0 }
  0xdd   :  { %v312_v40 = vadd.f32 %v695_v38, %v893_v36  ;;  %v306_v42 = vpop.f32.mrb[1].mxu1  ;;  %v227_v43 = vadd.f32 %v893_v36, %v226_v41 }
  0xde   :  { %v386_v45 = vmax.f32 %v232_v39, 0.0  ;;  %v307_v48 = vadd.f32 %v893_v36, %v306_v42 }
  0xdf   :  { %v402_v46 = vmax.f32 %v312_v40, 0.0  ;;  %v385_v47 = vmax.f32 %v227_v43, 0.0  ;;  %v674_v49 = vpop.f32.mrb[2].mxu0 }
  0xe0   :  { %v698_v50 = vpop.f32.mrb[2].mxu1  ;;  %v242_v51 = vadd.f32 %v674_v49, %v893_v36  ;;  %v236_v52 = vpop.f32.mrb[3].mxu0  ;;  %v425_v55 = vmul.f32 %v901_v44, %v386_v45  ;;  %v401_v59 = vmax.f32 %v307_v48, 0.0 }
  0xe1   :  { %v441_v53 = vmul.f32 %v901_v44, %v402_v46  ;;  %v322_v54 = vadd.f32 %v698_v50, %v893_v36  ;;  %v316_v56 = vpop.f32.mrb[3].mxu1  ;;  %v237_v62 = vadd.f32 %v893_v36, %v236_v52  ;;  %v424_v1 = vmul.f32 %v901_v44, %v385_v47 }
  0xe2   :  { %v388_v57 = vmax.f32 %v242_v51, 0.0  ;;  %458 = vadd.xlane.f32.xlu0 %v425_v55  ;;  %v317_v63 = vadd.f32 %v893_v36, %v316_v56  ;;  %v440_v11 = vmul.f32 %v901_v44, %v401_v59 }
  0xe3   :  { %490 = vadd.xlane.f32.xlu1 %v441_v53  ;;  %v404_v58 = vmax.f32 %v322_v54, 0.0  ;;  %v677_v60 = vpop.f32.mrb[4].mxu0  ;;  %v387_v9 = vmax.f32 %v237_v62, 0.0 }
  0xe4   :  { %v701_v61 = vpop.f32.mrb[4].mxu1  ;;  %v427_v0 = vmul.f32 %v901_v44, %v388_v57  ;;  %v246_v2 = vpop.f32.mrb[5].mxu0  ;;  %v252_v4 = vadd.f32 %v677_v60, %v893_v36  ;;  %v403_v10 = vmax.f32 %v317_v63, 0.0 }
  0xe5   :  { %v326_v3 = vpop.f32.mrb[5].mxu1  ;;  %v443_v5 = vmul.f32 %v901_v44, %v404_v58  ;;  %v247_v6 = vadd.f32 %v893_v36, %v246_v2  ;;  %v332_v14 = vadd.f32 %v701_v61, %v893_v36  ;;  %v426_v20 = vmul.f32 %v901_v44, %v387_v9 }
  0xe6   :  { %456 = vadd.xlane.f32.xlu0 %v424_v1  ;;  %v390_v15 = vmax.f32 %v252_v4, 0.0  ;;  %v327_v17 = vadd.f32 %v893_v36, %v326_v3  ;;  %v442_v21 = vmul.f32 %v901_v44, %v403_v10 }
  0xe7   :  { %462 = vadd.xlane.f32.xlu1 %v427_v0  ;;  %v680_v7 = vpop.f32.mrb[6].mxu0  ;;  %v389_v16 = vmax.f32 %v247_v6, 0.0  ;;  %v406_v24 = vmax.f32 %v332_v14, 0.0 }
  0xe8   :  { %v704_v8 = vpop.f32.mrb[6].mxu1  ;;  %v256_v12 = vpop.f32.mrb[7].mxu0  ;;  %v262_v25 = vadd.f32 %v680_v7, %v893_v36  ;;  %v405_v26 = vmax.f32 %v327_v17, 0.0  ;;  %v429_v28 = vmul.f32 %v901_v44, %v390_v15 }
  0xe9   :  { %v336_v13 = vpop.f32.mrb[7].mxu1  ;;  %v257_v27 = vadd.f32 %v893_v36, %v256_v12  ;;  %v428_v29 = vmul.f32 %v901_v44, %v389_v16  ;;  %v342_v34 = vadd.f32 %v704_v8, %v893_v36  ;;  %v445_v35 = vmul.f32 %v901_v44, %v406_v24 }
  0xea   :  { %488 = vadd.xlane.f32.xlu0 %v440_v11  ;;  %v392_v37 = vmax.f32 %v262_v25, 0.0  ;;  %v337_v39 = vadd.f32 %v893_v36, %v336_v13  ;;  %v444_v40 = vmul.f32 %v901_v44, %v405_v26 }
  0xeb   :  { %494 = vadd.xlane.f32.xlu1 %v443_v5  ;;  %v683_v18 = vpop.f32.mrb[8].mxu0  ;;  %v391_v38 = vmax.f32 %v257_v27, 0.0  ;;  %v408_v46 = vmax.f32 %v342_v34, 0.0 }
  0xec   :  { %v707_v19 = vpop.f32.mrb[8].mxu1  ;;  %v266_v22 = vpop.f32.mrb[9].mxu0  ;;  %v272_v47 = vadd.f32 %v683_v18, %v893_v36  ;;  %v407_v48 = vmax.f32 %v337_v39, 0.0  ;;  %v431_v50 = vmul.f32 %v901_v44, %v392_v37 }
  0xed   :  { %v346_v23 = vpop.f32.mrb[9].mxu1  ;;  %v267_v49 = vadd.f32 %v893_v36, %v266_v22  ;;  %v430_v51 = vmul.f32 %v901_v44, %v391_v38  ;;  %v352_v56 = vadd.f32 %v707_v19, %v893_v36  ;;  %v447_v57 = vmul.f32 %v901_v44, %v408_v46 }
  0xee   :  { %492 = vadd.xlane.f32.xlu0 %v442_v21  ;;  %v394_v58 = vmax.f32 %v272_v47, 0.0  ;;  %v347_v60 = vadd.f32 %v893_v36, %v346_v23  ;;  %v446_v61 = vmul.f32 %v901_v44, %v407_v48 }
  0xef   :  { %460 = vadd.xlane.f32.xlu1 %v426_v20  ;;  %v686_v30 = vpop.f32.mrb[10].mxu0  ;;  %v393_v59 = vmax.f32 %v267_v49, 0.0  ;;  %v410_v62 = vmax.f32 %v352_v56, 0.0 }
  0xf0   :  { %v710_v31 = vpop.f32.mrb[10].mxu1  ;;  %v276_v32 = vpop.f32.mrb[11].mxu0  ;;  %v282_v63 = vadd.f32 %v686_v30, %v893_v36  ;;  %v409_v0 = vmax.f32 %v347_v60, 0.0  ;;  %v433_v2 = vmul.f32 %v901_v44, %v394_v58 }
  0xf1   :  { %v356_v33 = vpop.f32.mrb[11].mxu1  ;;  %v277_v1 = vadd.f32 %v893_v36, %v276_v32  ;;  %v432_v3 = vmul.f32 %v901_v44, %v393_v59  ;;  %v362_v4 = vadd.f32 %v710_v31, %v893_v36  ;;  %v449_v5 = vmul.f32 %v901_v44, %v410_v62 }
  0xf2   :  { %464 = vadd.xlane.f32.xlu0 %v428_v29  ;;  %v396_v6 = vmax.f32 %v282_v63, 0.0  ;;  %v357_v8 = vadd.f32 %v893_v36, %v356_v33  ;;  %v448_v9 = vmul.f32 %v901_v44, %v409_v0 }
  0xf3   :  { %466 = vadd.xlane.f32.xlu1 %v429_v28  ;;  %v689_v41 = vpop.f32.mrb[12].mxu0  ;;  %v395_v7 = vmax.f32 %v277_v1, 0.0  ;;  %v412_v10 = vmax.f32 %v362_v4, 0.0 }
  0xf4   :  { %v713_v42 = vpop.f32.mrb[12].mxu1  ;;  %v286_v43 = vpop.f32.mrb[13].mxu0  ;;  %v292_v11 = vadd.f32 %v689_v41, %v893_v36  ;;  %v411_v12 = vmax.f32 %v357_v8, 0.0  ;;  %v435_v14 = vmul.f32 %v901_v44, %v396_v6  ;;  %v964_v41 = vld [vmem:[#allocation2] ss:$0 sm:$0xff] }
  0xf5   :  { %v366_v45 = vpop.f32.mrb[13].mxu1  ;;  %v287_v13 = vadd.f32 %v893_v36, %v286_v43  ;;  %v434_v15 = vmul.f32 %v901_v44, %v395_v7  ;;  %v372_v16 = vadd.f32 %v713_v42, %v893_v36  ;;  %v451_v17 = vmul.f32 %v901_v44, %v412_v10 }
  0xf6   :  { %496 = vadd.xlane.f32.xlu0 %v444_v40  ;;  %v398_v18 = vmax.f32 %v292_v11, 0.0  ;;  %v367_v20 = vadd.f32 %v893_v36, %v366_v45  ;;  %v450_v21 = vmul.f32 %v901_v44, %v411_v12 }
  0xf7   :  { %498 = vadd.xlane.f32.xlu1 %v445_v35  ;;  %v692_v52 = vpop.f32.mrb[14].mxu0  ;;  %v397_v19 = vmax.f32 %v287_v13, 0.0  ;;  %v414_v22 = vmax.f32 %v372_v16, 0.0 }
  0xf8   :  { %v716_v53 = vpop.f32.mrb[14].mxu1  ;;  %v296_v54 = vpop.f32.mrb[15].mxu0  ;;  %v302_v23 = vadd.f32 %v692_v52, %v893_v36  ;;  %v413_v24 = vmax.f32 %v367_v20, 0.0  ;;  %v437_v26 = vmul.f32 %v901_v44, %v398_v18 }
  0xf9   :  { %v376_v55 = vpop.f32.mrb[15].mxu1  ;;  %v297_v25 = vadd.f32 %v893_v36, %v296_v54  ;;  %v436_v27 = vmul.f32 %v901_v44, %v397_v19  ;;  %v382_v28 = vadd.f32 %v716_v53, %v893_v36  ;;  %v453_v29 = vmul.f32 %v901_v44, %v414_v22 }
  0xfa   :  { %468 = vadd.xlane.f32.xlu0 %v430_v51  ;;  %v400_v30 = vmax.f32 %v302_v23, 0.0  ;;  %v377_v32 = vadd.f32 %v893_v36, %v376_v55  ;;  %v452_v33 = vmul.f32 %v901_v44, %v413_v24 }
  0xfb   :  { %470 = vadd.xlane.f32.xlu1 %v431_v50  ;;  %v399_v31 = vmax.f32 %v297_v25, 0.0  ;;  %v416_v34 = vmax.f32 %v382_v28, 0.0 }
  0xfc   :  { %v415_v35 = vmax.f32 %v377_v32, 0.0  ;;  %v439_v37 = vmul.f32 %v901_v44, %v400_v30 }
  0xfd   :  { %v438_v38 = vmul.f32 %v901_v44, %v399_v31  ;;  %v455_v39 = vmul.f32 %v901_v44, %v416_v34 }
  0xfe   :  { %500 = vadd.xlane.f32.xlu0 %v446_v61  ;;  %v454_v40 = vmul.f32 %v901_v44, %v415_v35 }
  0xff   :  { %502 = vadd.xlane.f32.xlu1 %v447_v57 }
 0x102   :  { %472 = vadd.xlane.f32.xlu0 %v432_v3 }
 0x103   :  { %474 = vadd.xlane.f32.xlu1 %v433_v2 }
 0x106   :  { %504 = vadd.xlane.f32.xlu0 %v448_v9 }
 0x107   :  { %506 = vadd.xlane.f32.xlu1 %v449_v5 }
 0x10a   :  { %476 = vadd.xlane.f32.xlu0 %v434_v15 }
 0x10b   :  { %478 = vadd.xlane.f32.xlu1 %v435_v14 }
 0x10e   :  { %508 = vadd.xlane.f32.xlu0 %v450_v21 }
 0x10f   :  { %510 = vadd.xlane.f32.xlu1 %v451_v17 }
 0x112   :  { %480 = vadd.xlane.f32.xlu0 %v436_v27 }
 0x113   :  { %482 = vadd.xlane.f32.xlu1 %v437_v26 }
 0x116   :  { %512 = vadd.xlane.f32.xlu0 %v452_v33 }
 0x117   :  { %514 = vadd.xlane.f32.xlu1 %v453_v29 }
 0x11a   :  { %484 = vadd.xlane.f32.xlu0 %v438_v38 }
 0x11b   :  { %486 = vadd.xlane.f32.xlu1 %v439_v37 }
 0x11e   :  { %516 = vadd.xlane.f32.xlu0 %v454_v40 }
 0x11f   :  { %518 = vadd.xlane.f32.xlu1 %v455_v39 }
 0x16f   :  { %v459_v42 = vpop.xlane.xlu0 %458 }
 0x170   :  { %v491_v36 = vpop.xlane.xlu1 %490  ;;  %v528_v45 = vadd.f32 %v964_v41, %v459_v42 }
 0x171   :  { %v544_v43 = vadd.f32 %v964_v41, %v491_v36 }
 0x172   :  { %561 = vst.msk [vmem:[%s1131_s5 + $0x8] sm:$0xff] %vm559_vm1, %v528_v45 }
 0x173   :  { %577 = vst.msk [vmem:[%s1131_s5 + $0x88] sm:$0xff] %vm559_vm1, %v544_v43  ;;  %v457_v46 = vpop.xlane.xlu0 %456 }
 0x174   :  { %v463_v44 = vpop.xlane.xlu1 %462  ;;  %v527_v48 = vadd.f32 %v964_v41, %v457_v46 }
 0x175   :  { %v530_v47 = vadd.f32 %v964_v41, %v463_v44 }
 0x176   :  { %560 = vst.msk [vmem:[%s1131_s5] sm:$0xff] %vm559_vm1, %v527_v48 }
 0x177   :  { %563 = vst.msk [vmem:[%s1131_s5 + $0x18] sm:$0xff] %vm559_vm1, %v530_v47  ;;  %v489_v50 = vpop.xlane.xlu0 %488 }
 0x178   :  { %v495_v49 = vpop.xlane.xlu1 %494  ;;  %v543_v52 = vadd.f32 %v964_v41, %v489_v50 }
 0x179   :  { %v546_v51 = vadd.f32 %v964_v41, %v495_v49 }
 0x17a   :  { %576 = vst.msk [vmem:[%s1131_s5 + $0x80] sm:$0xff] %vm559_vm1, %v543_v52 }
 0x17b   :  { %579 = vst.msk [vmem:[%s1131_s5 + $0x98] sm:$0xff] %vm559_vm1, %v546_v51  ;;  %v493_v54 = vpop.xlane.xlu0 %492 }
 0x17c   :  { %v461_v53 = vpop.xlane.xlu1 %460  ;;  %v545_v56 = vadd.f32 %v964_v41, %v493_v54 }
 0x17d   :  { %v529_v55 = vadd.f32 %v964_v41, %v461_v53 }
 0x17e   :  { %578 = vst.msk [vmem:[%s1131_s5 + $0x90] sm:$0xff] %vm559_vm1, %v545_v56 }
 0x17f   :  { %562 = vst.msk [vmem:[%s1131_s5 + $0x10] sm:$0xff] %vm559_vm1, %v529_v55  ;;  %v465_v58 = vpop.xlane.xlu0 %464 }
 0x180   :  { %v467_v57 = vpop.xlane.xlu1 %466  ;;  %v531_v60 = vadd.f32 %v964_v41, %v465_v58 }
 0x181   :  { %v532_v59 = vadd.f32 %v964_v41, %v467_v57 }
 0x182   :  { %564 = vst.msk [vmem:[%s1131_s5 + $0x20] sm:$0xff] %vm559_vm1, %v531_v60 }
 0x183   :  { %565 = vst.msk [vmem:[%s1131_s5 + $0x28] sm:$0xff] %vm559_vm1, %v532_v59  ;;  %v497_v62 = vpop.xlane.xlu0 %496 }
 0x184   :  { %v499_v61 = vpop.xlane.xlu1 %498  ;;  %v547_v0 = vadd.f32 %v964_v41, %v497_v62 }
 0x185   :  { %v548_v63 = vadd.f32 %v964_v41, %v499_v61 }
 0x186   :  { %580 = vst.msk [vmem:[%s1131_s5 + $0xa0] sm:$0xff] %vm559_vm1, %v547_v0 }
 0x187   :  { %581 = vst.msk [vmem:[%s1131_s5 + $0xa8] sm:$0xff] %vm559_vm1, %v548_v63  ;;  %v469_v2 = vpop.xlane.xlu0 %468 }
 0x188   :  { %v471_v1 = vpop.xlane.xlu1 %470  ;;  %v533_v4 = vadd.f32 %v964_v41, %v469_v2 }
 0x189   :  { %v534_v3 = vadd.f32 %v964_v41, %v471_v1 }
 0x18a   :  { %566 = vst.msk [vmem:[%s1131_s5 + $0x30] sm:$0xff] %vm559_vm1, %v533_v4 }
 0x18b   :  { %567 = vst.msk [vmem:[%s1131_s5 + $0x38] sm:$0xff] %vm559_vm1, %v534_v3  ;;  %v501_v6 = vpop.xlane.xlu0 %500 }
 0x18c   :  { %v503_v5 = vpop.xlane.xlu1 %502  ;;  %v549_v8 = vadd.f32 %v964_v41, %v501_v6 }
 0x18d   :  { %v550_v7 = vadd.f32 %v964_v41, %v503_v5 }
 0x18e   :  { %582 = vst.msk [vmem:[%s1131_s5 + $0xb0] sm:$0xff] %vm559_vm1, %v549_v8 }
 0x18f   :  { %583 = vst.msk [vmem:[%s1131_s5 + $0xb8] sm:$0xff] %vm559_vm1, %v550_v7  ;;  %v473_v10 = vpop.xlane.xlu0 %472 }
 0x190   :  { %v475_v9 = vpop.xlane.xlu1 %474  ;;  %v535_v12 = vadd.f32 %v964_v41, %v473_v10 }
 0x191   :  { %v536_v11 = vadd.f32 %v964_v41, %v475_v9 }
 0x192   :  { %568 = vst.msk [vmem:[%s1131_s5 + $0x40] sm:$0xff] %vm559_vm1, %v535_v12 }
 0x193   :  { %569 = vst.msk [vmem:[%s1131_s5 + $0x48] sm:$0xff] %vm559_vm1, %v536_v11  ;;  %v505_v14 = vpop.xlane.xlu0 %504 }
 0x194   :  { %v507_v13 = vpop.xlane.xlu1 %506  ;;  %v551_v16 = vadd.f32 %v964_v41, %v505_v14 }
 0x195   :  { %v552_v15 = vadd.f32 %v964_v41, %v507_v13 }
 0x196   :  { %584 = vst.msk [vmem:[%s1131_s5 + $0xc0] sm:$0xff] %vm559_vm1, %v551_v16 }
 0x197   :  { %585 = vst.msk [vmem:[%s1131_s5 + $0xc8] sm:$0xff] %vm559_vm1, %v552_v15  ;;  %v477_v18 = vpop.xlane.xlu0 %476 }
 0x198   :  { %v479_v17 = vpop.xlane.xlu1 %478  ;;  %v537_v20 = vadd.f32 %v964_v41, %v477_v18 }
 0x199   :  { %v538_v19 = vadd.f32 %v964_v41, %v479_v17 }
 0x19a   :  { %570 = vst.msk [vmem:[%s1131_s5 + $0x50] sm:$0xff] %vm559_vm1, %v537_v20 }
 0x19b   :  { %571 = vst.msk [vmem:[%s1131_s5 + $0x58] sm:$0xff] %vm559_vm1, %v538_v19  ;;  %v509_v22 = vpop.xlane.xlu0 %508 }
 0x19c   :  { %v511_v21 = vpop.xlane.xlu1 %510  ;;  %v553_v24 = vadd.f32 %v964_v41, %v509_v22 }
 0x19d   :  { %v554_v23 = vadd.f32 %v964_v41, %v511_v21 }
 0x19e   :  { %586 = vst.msk [vmem:[%s1131_s5 + $0xd0] sm:$0xff] %vm559_vm1, %v553_v24 }
 0x19f   :  { %587 = vst.msk [vmem:[%s1131_s5 + $0xd8] sm:$0xff] %vm559_vm1, %v554_v23  ;;  %v481_v26 = vpop.xlane.xlu0 %480 }
 0x1a0   :  { %v483_v25 = vpop.xlane.xlu1 %482  ;;  %v539_v28 = vadd.f32 %v964_v41, %v481_v26 }
 0x1a1   :  { %v540_v27 = vadd.f32 %v964_v41, %v483_v25 }
 0x1a2   :  { %572 = vst.msk [vmem:[%s1131_s5 + $0x60] sm:$0xff] %vm559_vm1, %v539_v28 }
 0x1a3   :  { %573 = vst.msk [vmem:[%s1131_s5 + $0x68] sm:$0xff] %vm559_vm1, %v540_v27  ;;  %v513_v30 = vpop.xlane.xlu0 %512 }
 0x1a4   :  { %v515_v29 = vpop.xlane.xlu1 %514  ;;  %v555_v32 = vadd.f32 %v964_v41, %v513_v30 }
 0x1a5   :  { %v556_v31 = vadd.f32 %v964_v41, %v515_v29 }
 0x1a6   :  { %588 = vst.msk [vmem:[%s1131_s5 + $0xe0] sm:$0xff] %vm559_vm1, %v555_v32 }
 0x1a7   :  { %589 = vst.msk [vmem:[%s1131_s5 + $0xe8] sm:$0xff] %vm559_vm1, %v556_v31  ;;  %v485_v34 = vpop.xlane.xlu0 %484 }
 0x1a8   :  { %v487_v33 = vpop.xlane.xlu1 %486  ;;  %v541_v37 = vadd.f32 %v964_v41, %v485_v34 }
 0x1a9   :  { %v542_v35 = vadd.f32 %v964_v41, %v487_v33 }
 0x1aa   :  { %574 = vst.msk [vmem:[%s1131_s5 + $0x70] sm:$0xff] %vm559_vm1, %v541_v37 }
 0x1ab   :  { %575 = vst.msk [vmem:[%s1131_s5 + $0x78] sm:$0xff] %vm559_vm1, %v542_v35  ;;  %v517_v39 = vpop.xlane.xlu0 %516 }
 0x1ac   :  { %v519_v38 = vpop.xlane.xlu1 %518  ;;  %v557_v36 = vadd.f32 %v964_v41, %v517_v39 }
 0x1ad   :  { %v558_v40 = vadd.f32 %v964_v41, %v519_v38 }
 0x1ae   :  { %590 = vst.msk [vmem:[%s1131_s5 + $0xf0] sm:$0xff] %vm559_vm1, %v557_v36 }
 0x1af   :  { %591 = vst.msk [vmem:[%s1131_s5 + $0xf8] sm:$0xff] %vm559_vm1, %v558_v40 }

</bundles_post_ra>
